<compile_context>
chip_gen: v6e
topology: v6e:2x2x1
jax: 0.10.0
libtpu: 0.0.40
codegen_flags: <defaults>
</compile_context>

<pallas_src>
import functools

import numpy as np
import jax
import jax.numpy as jnp
from jax.experimental import pallas as pl
from jax.experimental.pallas import tpu as pltpu

CHANNEL = 15
DATALENGTH = 16
CONV_LAYER_SIZES = [(15, 1), (8, 2), (4, 2)]   # (channels, stride); first entry is the input
FC_LAYER_SIZES = [16, 32]
LATENT_SIZE = 8
KERNEL_SIZE = 6
PADDING = 2
BN_EPS = 1e-5


def _out_len(l_in, stride):
    return (l_in + 2 * PADDING - KERNEL_SIZE) // stride + 1


# Static derived shapes.
C1_IN, L1_IN = CHANNEL, DATALENGTH
C1_OUT, S1 = CONV_LAYER_SIZES[1]
L1_OUT = _out_len(L1_IN, S1)            # 8
C2_OUT, S2 = CONV_LAYER_SIZES[2]
L2_OUT = _out_len(L1_OUT, S2)           # 4
D_FLAT = C2_OUT * L2_OUT                # 16 == FC_LAYER_SIZES[0]
D_HID = FC_LAYER_SIZES[1]               # 32


# ---------------------------------------------------------------------------
# Fused Pallas kernel
# ---------------------------------------------------------------------------
def _bn_relu(y, gamma, beta, c, l_out, n):
    """Training-mode BatchNorm1d + ReLU.

    y: (B, l_out*c) with column ordering (l slow, c fast).  Per-channel statistics
    are reduced over (batch, l) with only static lane-slices / sublane reductions
    (no in-kernel reshapes), and the affine is folded into one FMA per element.
    """
    blocks = [y[:, i * c:(i + 1) * c] for i in range(l_out)]
    s = blocks[0]
    for b in blocks[1:]:
        s = s + b
    mean = jnp.sum(s, axis=0, keepdims=True) * (1.0 / n)                 # (1, c)
    s2 = None
    for b in blocks:
        d = b - mean
        s2 = d * d if s2 is None else s2 + d * d
    var = jnp.sum(s2, axis=0, keepdims=True) * (1.0 / n)                 # biased variance
    scale = gamma * jax.lax.rsqrt(var + BN_EPS)
    shift = beta - mean * scale
    return jnp.concatenate(
        [jnp.maximum(b * scale + shift, 0.0) for b in blocks], axis=-1)


def _encoder_kernel(x_ref, w1_ref, g1_ref, b1_ref, w2_ref, g2_ref, b2_ref,
                    wfc_ref, bfc_ref, wh_ref, bh_ref, out_ref):
    batch = x_ref.shape[0]
    x = x_ref[...]                                                        # (B, C*L) raw input
    # Conv1 as one matmul (padding + im2col folded into the Toeplitz weight).
    y1 = jnp.dot(x, w1_ref[...], preferred_element_type=jnp.float32)     # (B, L1*C1out)
    a1 = _bn_relu(y1, g1_ref[...], b1_ref[...], C1_OUT, L1_OUT, batch * L1_OUT)
    # Conv2 as one matmul.
    y2 = jnp.dot(a1, w2_ref[...], preferred_element_type=jnp.float32)    # (B, L2*C2out)
    a2 = _bn_relu(y2, g2_ref[...], b2_ref[...], C2_OUT, L2_OUT, batch * L2_OUT)
    # Flatten is a no-op: a2 is already (B, 16); the FC weight rows were permuted
    # host-side to match this (l, c) ordering vs. PyTorch's (c, l) Flatten.
    h = jnp.dot(a2, wfc_ref[...], preferred_element_type=jnp.float32) + bfc_ref[...]
    h = jnp.maximum(h, 0.0)                                               # (B, 32)
    # Both latent heads fused into one matmul -> single wider output store.
    out_ref[...] = jnp.dot(h, wh_ref[...], preferred_element_type=jnp.float32) + bh_ref[...]


def _full_spec(shape):
    # Whole array as one block (everything here is a few KB; all weights +
    # activations are VMEM resident for the single grid step).
    return pl.BlockSpec(shape, lambda i: tuple(0 for _ in shape))


def encoder_forward(x, fused):
    """x: (batch, CHANNEL*DATALENGTH) f32 -> (means, log_vars), each (batch, LATENT_SIZE)."""
    # TODO(synk): conditional=True path (idx2onehot + cat) is not exercised; with the
    # conv branch active the original torch code would concat a 2-D onehot onto a 3-D tensor.
    B = x.shape[0]
    operands = (x, fused["w1"], fused["g1"], fused["b1"],
                fused["w2"], fused["g2"], fused["b2"],
                fused["wfc"], fused["bfc"], fused["wh"], fused["bh"])
    out = pl.pallas_call(
        _encoder_kernel,
        out_shape=jax.ShapeDtypeStruct((B, 2 * LATENT_SIZE), jnp.float32),
        grid=(1,),
        in_specs=[_full_spec(op.shape) for op in operands],
        out_specs=_full_spec((B, 2 * LATENT_SIZE)),
        compiler_params=pltpu.CompilerParams(dimension_semantics=("arbitrary",)),
    )(*operands)
    return out[:, :LATENT_SIZE], out[:, LATENT_SIZE:]


# ---------------------------------------------------------------------------
# Parameters (PyTorch-layout) and host-side fusion into kernel operands
# ---------------------------------------------------------------------------
def init_params(key):
    params = {"conv": [], "fc": {}}
    l_in = DATALENGTH
    for (cin, _), (cout, stride) in zip(CONV_LAYER_SIZES[:-1], CONV_LAYER_SIZES[1:]):
        key, kw = jax.random.split(key)
        w = jax.random.normal(kw, (cout, cin, KERNEL_SIZE), jnp.float32)
        w = w / np.sqrt(cin * KERNEL_SIZE)
        gamma = jnp.ones((1, cout), jnp.float32)     # nn.BatchNorm1d default affine init
        beta = jnp.zeros((1, cout), jnp.float32)
        params["conv"].append({"w": w, "gamma": gamma, "beta": beta,
                               "stride": stride, "l_in": l_in})
        l_in = _out_len(l_in, stride)

    def linear(k, d_in, d_out):
        kw, kb = jax.random.split(k)
        s = 1.0 / np.sqrt(d_in)
        return (jax.random.uniform(kw, (d_in, d_out), jnp.float32, -s, s),
                jax.random.uniform(kb, (1, d_out), jnp.float32, -s, s))

    key, k1, k2, k3 = jax.random.split(key, 4)
    params["fc"]["w1"], params["fc"]["b1"] = linear(k1, FC_LAYER_SIZES[0], FC_LAYER_SIZES[1])
    params["fc"]["wm"], params["fc"]["bm"] = linear(k2, FC_LAYER_SIZES[1], LATENT_SIZE)
    params["fc"]["wv"], params["fc"]["bv"] = linear(k3, FC_LAYER_SIZES[1], LATENT_SIZE)
    return params


def _conv_as_matmul(wt, l_in, stride, cl_rows):
    """Expand a Conv1d weight (Cout, Cin, K) into a dense (L_in*Cin, L_out*Cout) matrix
    so the conv becomes a single matmul.  Zero-padding is folded away (padded taps are
    simply absent).  Row ordering: c*L_in + l if cl_rows (raw NCL-flatten order of the
    network input), else l*Cin + c (the kernel's internal activation ordering)."""
    wt = np.asarray(wt)
    cout, cin, k = wt.shape
    l_out = (l_in + 2 * PADDING - k) // stride + 1
    w = np.zeros((l_in * cin, l_out * cout), np.float32)
    for lo in range(l_out):
        for kk in range(k):
            l = lo * stride + kk - PADDING
            if 0 <= l < l_in:
                for c in range(cin):
                    row = c * l_in + l if cl_rows else l * cin + c
                    w[row, lo * cout:(lo + 1) * cout] = wt[:, c, kk]
    return jnp.asarray(w)


def prepare_fused_params(params):
    conv1, conv2 = params["conv"]
    fc = params["fc"]
    fused = {
        "w1": _conv_as_matmul(conv1["w"], L1_IN, conv1["stride"], cl_rows=True),    # (240, 64)
        "g1": conv1["gamma"], "b1": conv1["beta"],
        "w2": _conv_as_matmul(conv2["w"], L1_OUT, conv2["stride"], cl_rows=False),  # (64, 16)
        "g2": conv2["gamma"], "b2": conv2["beta"],
    }
    # Kernel's flattened activation is (l slow, c fast); PyTorch Flatten is (c slow, l fast):
    # permute the FC weight rows accordingly.
    w1 = np.asarray(fc["w1"]).reshape(C2_OUT, L2_OUT, D_HID)
    fused["wfc"] = jnp.asarray(w1.transpose(1, 0, 2).reshape(D_FLAT, D_HID))        # (16, 32)
    fused["bfc"] = fc["b1"]
    fused["wh"] = jnp.concatenate([fc["wm"], fc["wv"]], axis=1)                     # (32, 16)
    fused["bh"] = jnp.concatenate([fc["bm"], fc["bv"]], axis=1)                     # (1, 16)
    return fused


# ---------------------------------------------------------------------------
# Pure-jnp reference (PyTorch-equivalent math) for verification
# ---------------------------------------------------------------------------
def _im2col(h, k, stride, pad):
    B, C, L = h.shape
    hp = jnp.pad(h, ((0, 0), (0, 0), (pad, pad)))
    l_out = (L + 2 * pad - k) // stride + 1
    idx = jnp.arange(l_out)[:, None] * stride + jnp.arange(k)[None, :]
    patches = hp[:, :, idx]                                   # (B, C, l_out, K)
    patches = jnp.transpose(patches, (0, 2, 1, 3)).reshape(B * l_out, C * k)
    return patches, l_out


def encoder_forward_ref(x, params):
    B = x.shape[0]
    h = x.reshape(B, CHANNEL, DATALENGTH)
    for layer in params["conv"]:
        w2d = layer["w"].reshape(layer["w"].shape[0], -1).T   # (Cin*K, Cout), (c,k) order
        patches, l_out = _im2col(h, KERNEL_SIZE, layer["stride"], PADDING)
        y = patches @ w2d
        mean = jnp.mean(y, axis=0, keepdims=True)
        var = jnp.mean((y - mean) ** 2, axis=0, keepdims=True)
        y = jnp.maximum((y - mean) / jnp.sqrt(var + BN_EPS) * layer["gamma"] + layer["beta"], 0.0)
        h = jnp.transpose(y.reshape(B, l_out, -1), (0, 2, 1))  # back to NCL
    flat = h.reshape(B, -1)                                    # PyTorch Flatten: (c slow, l fast)
    fc = params["fc"]
    hid = jnp.maximum(flat @ fc["w1"] + fc["b1"], 0.0)
    return hid @ fc["wm"] + fc["bm"], hid @ fc["wv"] + fc["bv"]


if __name__ == "__main__":
    key = jax.random.PRNGKey(0)
    key, kx, kp = jax.random.split(key, 3)
    batch = 2
    x = jax.random.normal(kx, (batch, CHANNEL * DATALENGTH), jnp.float32)
    params = init_params(kp)
    fused = prepare_fused_params(params)

    fwd = jax.jit(functools.partial(encoder_forward, fused=fused))
    means, log_vars = fwd(x)
    jax.block_until_ready((means, log_vars))

    means_ref, log_vars_ref = encoder_forward_ref(x, params)
    assert means.shape == (batch, LATENT_SIZE) and log_vars.shape == (batch, LATENT_SIZE)
    assert jnp.allclose(means, means_ref, atol=1e-4, rtol=1e-4)
    assert jnp.allclose(log_vars, log_vars_ref, atol=1e-4, rtol=1e-4)
    print("KERNEL_OK")
</pallas_src>

<mosaic_0001>
module attributes {stable_mosaic.version = 11 : i64} {
  func.func @_encoder_kernel(%arg0: i32, %arg1: memref<2x240xf32, #tpu.memory_space<vmem>>, %arg2: memref<240x64xf32, #tpu.memory_space<vmem>>, %arg3: memref<1x8xf32, #tpu.memory_space<vmem>>, %arg4: memref<1x8xf32, #tpu.memory_space<vmem>>, %arg5: memref<64x16xf32, #tpu.memory_space<vmem>>, %arg6: memref<1x4xf32, #tpu.memory_space<vmem>>, %arg7: memref<1x4xf32, #tpu.memory_space<vmem>>, %arg8: memref<16x32xf32, #tpu.memory_space<vmem>>, %arg9: memref<1x32xf32, #tpu.memory_space<vmem>>, %arg10: memref<32x16xf32, #tpu.memory_space<vmem>>, %arg11: memref<1x16xf32, #tpu.memory_space<vmem>>, %arg12: memref<2x16xf32, #tpu.memory_space<vmem>>) attributes {dimension_semantics = [#tpu.dimension_semantics<arbitrary>], iteration_bounds = array<i64: 1>, scalar_prefetch = 0 : i64, scratch_operands = 0 : i64, tpu.core_type = #tpu.core_type<tc>, window_params = [{pipeline_mode = #tpu.pipeline_mode<synchronous>, transform_indices = @transform_0, window_bounds = array<i64: 2, 240>}, {pipeline_mode = #tpu.pipeline_mode<synchronous>, transform_indices = @transform_1, window_bounds = array<i64: 240, 64>}, {pipeline_mode = #tpu.pipeline_mode<synchronous>, transform_indices = @transform_2, window_bounds = array<i64: 1, 8>}, {pipeline_mode = #tpu.pipeline_mode<synchronous>, transform_indices = @transform_3, window_bounds = array<i64: 1, 8>}, {pipeline_mode = #tpu.pipeline_mode<synchronous>, transform_indices = @transform_4, window_bounds = array<i64: 64, 16>}, {pipeline_mode = #tpu.pipeline_mode<synchronous>, transform_indices = @transform_5, window_bounds = array<i64: 1, 4>}, {pipeline_mode = #tpu.pipeline_mode<synchronous>, transform_indices = @transform_6, window_bounds = array<i64: 1, 4>}, {pipeline_mode = #tpu.pipeline_mode<synchronous>, transform_indices = @transform_7, window_bounds = array<i64: 16, 32>}, {pipeline_mode = #tpu.pipeline_mode<synchronous>, transform_indices = @transform_8, window_bounds = array<i64: 1, 32>}, {pipeline_mode = #tpu.pipeline_mode<synchronous>, transform_indices = @transform_9, window_bounds = array<i64: 32, 16>}, {pipeline_mode = #tpu.pipeline_mode<synchronous>, transform_indices = @transform_10, window_bounds = array<i64: 1, 16>}, {pipeline_mode = #tpu.pipeline_mode<synchronous>, transform_indices = @transform_11, window_bounds = array<i64: 2, 16>}]} {
    %c0 = arith.constant 0 : index
    %c0_0 = arith.constant 0 : index
    %0 = vector.load %arg1[%c0, %c0_0] : memref<2x240xf32, #tpu.memory_space<vmem>>, vector<2x240xf32>
    %c0_1 = arith.constant 0 : index
    %c0_2 = arith.constant 0 : index
    %1 = vector.load %arg2[%c0_1, %c0_2] : memref<240x64xf32, #tpu.memory_space<vmem>>, vector<240x64xf32>
    %cst = arith.constant dense<0.000000e+00> : vector<2x64xf32>
    %2 = tpu.matmul %0, %1, %cst {dimension_numbers = #tpu.dot_dimension_numbers<[1], [0], [0], [1], [0, 0, 1, 1], [], []>} : vector<2x240xf32>, vector<240x64xf32>, vector<2x64xf32> -> vector<2x64xf32>
    %c0_3 = arith.constant 0 : index
    %c0_4 = arith.constant 0 : index
    %3 = vector.load %arg3[%c0_3, %c0_4] : memref<1x8xf32, #tpu.memory_space<vmem>>, vector<1x8xf32>
    %c0_5 = arith.constant 0 : index
    %c0_6 = arith.constant 0 : index
    %4 = vector.load %arg4[%c0_5, %c0_6] : memref<1x8xf32, #tpu.memory_space<vmem>>, vector<1x8xf32>
    %5 = vector.extract_strided_slice %2 {offsets = [0, 0], sizes = [2, 8], strides = [1, 1]} : vector<2x64xf32> to vector<2x8xf32>
    %6 = vector.extract_strided_slice %2 {offsets = [0, 8], sizes = [2, 8], strides = [1, 1]} : vector<2x64xf32> to vector<2x8xf32>
    %7 = vector.extract_strided_slice %2 {offsets = [0, 16], sizes = [2, 8], strides = [1, 1]} : vector<2x64xf32> to vector<2x8xf32>
    %8 = vector.extract_strided_slice %2 {offsets = [0, 24], sizes = [2, 8], strides = [1, 1]} : vector<2x64xf32> to vector<2x8xf32>
    %9 = vector.extract_strided_slice %2 {offsets = [0, 32], sizes = [2, 8], strides = [1, 1]} : vector<2x64xf32> to vector<2x8xf32>
    %10 = vector.extract_strided_slice %2 {offsets = [0, 40], sizes = [2, 8], strides = [1, 1]} : vector<2x64xf32> to vector<2x8xf32>
    %11 = vector.extract_strided_slice %2 {offsets = [0, 48], sizes = [2, 8], strides = [1, 1]} : vector<2x64xf32> to vector<2x8xf32>
    %12 = vector.extract_strided_slice %2 {offsets = [0, 56], sizes = [2, 8], strides = [1, 1]} : vector<2x64xf32> to vector<2x8xf32>
    %13 = arith.addf %5, %6 : vector<2x8xf32>
    %14 = arith.addf %13, %7 : vector<2x8xf32>
    %15 = arith.addf %14, %8 : vector<2x8xf32>
    %16 = arith.addf %15, %9 : vector<2x8xf32>
    %17 = arith.addf %16, %10 : vector<2x8xf32>
    %18 = arith.addf %17, %11 : vector<2x8xf32>
    %19 = arith.addf %18, %12 : vector<2x8xf32>
    %cst_7 = arith.constant dense<0.000000e+00> : vector<8xf32>
    %20 = vector.multi_reduction <add>, %19, %cst_7 [0] : vector<2x8xf32> to vector<8xf32>
    %21 = vector.shape_cast %20 : vector<8xf32> to vector<1x8xf32>
    %cst_8 = arith.constant 6.250000e-02 : f32
    %22 = vector.broadcast %cst_8 : f32 to vector<1x8xf32>
    %23 = arith.mulf %21, %22 : vector<1x8xf32>
    %24 = vector.broadcast %23 : vector<1x8xf32> to vector<2x8xf32>
    %25 = arith.subf %5, %24 : vector<2x8xf32>
    %26 = arith.mulf %25, %25 : vector<2x8xf32>
    %27 = vector.broadcast %23 : vector<1x8xf32> to vector<2x8xf32>
    %28 = arith.subf %6, %27 : vector<2x8xf32>
    %29 = arith.mulf %28, %28 : vector<2x8xf32>
    %30 = arith.addf %26, %29 : vector<2x8xf32>
    %31 = vector.broadcast %23 : vector<1x8xf32> to vector<2x8xf32>
    %32 = arith.subf %7, %31 : vector<2x8xf32>
    %33 = arith.mulf %32, %32 : vector<2x8xf32>
    %34 = arith.addf %30, %33 : vector<2x8xf32>
    %35 = vector.broadcast %23 : vector<1x8xf32> to vector<2x8xf32>
    %36 = arith.subf %8, %35 : vector<2x8xf32>
    %37 = arith.mulf %36, %36 : vector<2x8xf32>
    %38 = arith.addf %34, %37 : vector<2x8xf32>
    %39 = vector.broadcast %23 : vector<1x8xf32> to vector<2x8xf32>
    %40 = arith.subf %9, %39 : vector<2x8xf32>
    %41 = arith.mulf %40, %40 : vector<2x8xf32>
    %42 = arith.addf %38, %41 : vector<2x8xf32>
    %43 = vector.broadcast %23 : vector<1x8xf32> to vector<2x8xf32>
    %44 = arith.subf %10, %43 : vector<2x8xf32>
    %45 = arith.mulf %44, %44 : vector<2x8xf32>
    %46 = arith.addf %42, %45 : vector<2x8xf32>
    %47 = vector.broadcast %23 : vector<1x8xf32> to vector<2x8xf32>
    %48 = arith.subf %11, %47 : vector<2x8xf32>
    %49 = arith.mulf %48, %48 : vector<2x8xf32>
    %50 = arith.addf %46, %49 : vector<2x8xf32>
    %51 = vector.broadcast %23 : vector<1x8xf32> to vector<2x8xf32>
    %52 = arith.subf %12, %51 : vector<2x8xf32>
    %53 = arith.mulf %52, %52 : vector<2x8xf32>
    %54 = arith.addf %50, %53 : vector<2x8xf32>
    %cst_9 = arith.constant dense<0.000000e+00> : vector<8xf32>
    %55 = vector.multi_reduction <add>, %54, %cst_9 [0] : vector<2x8xf32> to vector<8xf32>
    %56 = vector.shape_cast %55 : vector<8xf32> to vector<1x8xf32>
    %cst_10 = arith.constant 6.250000e-02 : f32
    %57 = vector.broadcast %cst_10 : f32 to vector<1x8xf32>
    %58 = arith.mulf %56, %57 : vector<1x8xf32>
    %cst_11 = arith.constant 9.99999974E-6 : f32
    %59 = vector.broadcast %cst_11 : f32 to vector<1x8xf32>
    %60 = arith.addf %58, %59 : vector<1x8xf32>
    %61 = math.rsqrt %60 : vector<1x8xf32>
    %62 = arith.mulf %3, %61 : vector<1x8xf32>
    %63 = arith.mulf %23, %62 : vector<1x8xf32>
    %64 = arith.subf %4, %63 : vector<1x8xf32>
    %65 = vector.broadcast %62 : vector<1x8xf32> to vector<2x8xf32>
    %66 = arith.mulf %5, %65 : vector<2x8xf32>
    %67 = vector.broadcast %64 : vector<1x8xf32> to vector<2x8xf32>
    %68 = arith.addf %66, %67 : vector<2x8xf32>
    %cst_12 = arith.constant 0.000000e+00 : f32
    %69 = vector.broadcast %cst_12 : f32 to vector<2x8xf32>
    %70 = arith.maximumf %68, %69 : vector<2x8xf32>
    %71 = vector.broadcast %62 : vector<1x8xf32> to vector<2x8xf32>
    %72 = arith.mulf %6, %71 : vector<2x8xf32>
    %73 = vector.broadcast %64 : vector<1x8xf32> to vector<2x8xf32>
    %74 = arith.addf %72, %73 : vector<2x8xf32>
    %cst_13 = arith.constant 0.000000e+00 : f32
    %75 = vector.broadcast %cst_13 : f32 to vector<2x8xf32>
    %76 = arith.maximumf %74, %75 : vector<2x8xf32>
    %77 = vector.broadcast %62 : vector<1x8xf32> to vector<2x8xf32>
    %78 = arith.mulf %7, %77 : vector<2x8xf32>
    %79 = vector.broadcast %64 : vector<1x8xf32> to vector<2x8xf32>
    %80 = arith.addf %78, %79 : vector<2x8xf32>
    %cst_14 = arith.constant 0.000000e+00 : f32
    %81 = vector.broadcast %cst_14 : f32 to vector<2x8xf32>
    %82 = arith.maximumf %80, %81 : vector<2x8xf32>
    %83 = vector.broadcast %62 : vector<1x8xf32> to vector<2x8xf32>
    %84 = arith.mulf %8, %83 : vector<2x8xf32>
    %85 = vector.broadcast %64 : vector<1x8xf32> to vector<2x8xf32>
    %86 = arith.addf %84, %85 : vector<2x8xf32>
    %cst_15 = arith.constant 0.000000e+00 : f32
    %87 = vector.broadcast %cst_15 : f32 to vector<2x8xf32>
    %88 = arith.maximumf %86, %87 : vector<2x8xf32>
    %89 = vector.broadcast %62 : vector<1x8xf32> to vector<2x8xf32>
    %90 = arith.mulf %9, %89 : vector<2x8xf32>
    %91 = vector.broadcast %64 : vector<1x8xf32> to vector<2x8xf32>
    %92 = arith.addf %90, %91 : vector<2x8xf32>
    %cst_16 = arith.constant 0.000000e+00 : f32
    %93 = vector.broadcast %cst_16 : f32 to vector<2x8xf32>
    %94 = arith.maximumf %92, %93 : vector<2x8xf32>
    %95 = vector.broadcast %62 : vector<1x8xf32> to vector<2x8xf32>
    %96 = arith.mulf %10, %95 : vector<2x8xf32>
    %97 = vector.broadcast %64 : vector<1x8xf32> to vector<2x8xf32>
    %98 = arith.addf %96, %97 : vector<2x8xf32>
    %cst_17 = arith.constant 0.000000e+00 : f32
    %99 = vector.broadcast %cst_17 : f32 to vector<2x8xf32>
    %100 = arith.maximumf %98, %99 : vector<2x8xf32>
    %101 = vector.broadcast %62 : vector<1x8xf32> to vector<2x8xf32>
    %102 = arith.mulf %11, %101 : vector<2x8xf32>
    %103 = vector.broadcast %64 : vector<1x8xf32> to vector<2x8xf32>
    %104 = arith.addf %102, %103 : vector<2x8xf32>
    %cst_18 = arith.constant 0.000000e+00 : f32
    %105 = vector.broadcast %cst_18 : f32 to vector<2x8xf32>
    %106 = arith.maximumf %104, %105 : vector<2x8xf32>
    %107 = vector.broadcast %62 : vector<1x8xf32> to vector<2x8xf32>
    %108 = arith.mulf %12, %107 : vector<2x8xf32>
    %109 = vector.broadcast %64 : vector<1x8xf32> to vector<2x8xf32>
    %110 = arith.addf %108, %109 : vector<2x8xf32>
    %cst_19 = arith.constant 0.000000e+00 : f32
    %111 = vector.broadcast %cst_19 : f32 to vector<2x8xf32>
    %112 = arith.maximumf %110, %111 : vector<2x8xf32>
    %113 = tpu.concatenate %70, %76, %82, %88, %94, %100, %106, %112 in 1 : vector<2x8xf32>, vector<2x8xf32>, vector<2x8xf32>, vector<2x8xf32>, vector<2x8xf32>, vector<2x8xf32>, vector<2x8xf32>, vector<2x8xf32> -> vector<2x64xf32>
    %c0_20 = arith.constant 0 : index
    %c0_21 = arith.constant 0 : index
    %114 = vector.load %arg5[%c0_20, %c0_21] : memref<64x16xf32, #tpu.memory_space<vmem>>, vector<64x16xf32>
    %cst_22 = arith.constant dense<0.000000e+00> : vector<2x16xf32>
    %115 = tpu.matmul %113, %114, %cst_22 {dimension_numbers = #tpu.dot_dimension_numbers<[1], [0], [0], [1], [0, 0, 1, 1], [], []>} : vector<2x64xf32>, vector<64x16xf32>, vector<2x16xf32> -> vector<2x16xf32>
    %c0_23 = arith.constant 0 : index
    %c0_24 = arith.constant 0 : index
    %116 = vector.load %arg6[%c0_23, %c0_24] : memref<1x4xf32, #tpu.memory_space<vmem>>, vector<1x4xf32>
    %c0_25 = arith.constant 0 : index
    %c0_26 = arith.constant 0 : index
    %117 = vector.load %arg7[%c0_25, %c0_26] : memref<1x4xf32, #tpu.memory_space<vmem>>, vector<1x4xf32>
    %118 = vector.extract_strided_slice %115 {offsets = [0, 0], sizes = [2, 4], strides = [1, 1]} : vector<2x16xf32> to vector<2x4xf32>
    %119 = vector.extract_strided_slice %115 {offsets = [0, 4], sizes = [2, 4], strides = [1, 1]} : vector<2x16xf32> to vector<2x4xf32>
    %120 = vector.extract_strided_slice %115 {offsets = [0, 8], sizes = [2, 4], strides = [1, 1]} : vector<2x16xf32> to vector<2x4xf32>
    %121 = vector.extract_strided_slice %115 {offsets = [0, 12], sizes = [2, 4], strides = [1, 1]} : vector<2x16xf32> to vector<2x4xf32>
    %122 = arith.addf %118, %119 : vector<2x4xf32>
    %123 = arith.addf %122, %120 : vector<2x4xf32>
    %124 = arith.addf %123, %121 : vector<2x4xf32>
    %cst_27 = arith.constant dense<0.000000e+00> : vector<4xf32>
    %125 = vector.multi_reduction <add>, %124, %cst_27 [0] : vector<2x4xf32> to vector<4xf32>
    %126 = vector.shape_cast %125 : vector<4xf32> to vector<1x4xf32>
    %cst_28 = arith.constant 1.250000e-01 : f32
    %127 = vector.broadcast %cst_28 : f32 to vector<1x4xf32>
    %128 = arith.mulf %126, %127 : vector<1x4xf32>
    %129 = vector.broadcast %128 : vector<1x4xf32> to vector<2x4xf32>
    %130 = arith.subf %118, %129 : vector<2x4xf32>
    %131 = arith.mulf %130, %130 : vector<2x4xf32>
    %132 = vector.broadcast %128 : vector<1x4xf32> to vector<2x4xf32>
    %133 = arith.subf %119, %132 : vector<2x4xf32>
    %134 = arith.mulf %133, %133 : vector<2x4xf32>
    %135 = arith.addf %131, %134 : vector<2x4xf32>
    %136 = vector.broadcast %128 : vector<1x4xf32> to vector<2x4xf32>
    %137 = arith.subf %120, %136 : vector<2x4xf32>
    %138 = arith.mulf %137, %137 : vector<2x4xf32>
    %139 = arith.addf %135, %138 : vector<2x4xf32>
    %140 = vector.broadcast %128 : vector<1x4xf32> to vector<2x4xf32>
    %141 = arith.subf %121, %140 : vector<2x4xf32>
    %142 = arith.mulf %141, %141 : vector<2x4xf32>
    %143 = arith.addf %139, %142 : vector<2x4xf32>
    %cst_29 = arith.constant dense<0.000000e+00> : vector<4xf32>
    %144 = vector.multi_reduction <add>, %143, %cst_29 [0] : vector<2x4xf32> to vector<4xf32>
    %145 = vector.shape_cast %144 : vector<4xf32> to vector<1x4xf32>
    %cst_30 = arith.constant 1.250000e-01 : f32
    %146 = vector.broadcast %cst_30 : f32 to vector<1x4xf32>
    %147 = arith.mulf %145, %146 : vector<1x4xf32>
    %cst_31 = arith.constant 9.99999974E-6 : f32
    %148 = vector.broadcast %cst_31 : f32 to vector<1x4xf32>
    %149 = arith.addf %147, %148 : vector<1x4xf32>
    %150 = math.rsqrt %149 : vector<1x4xf32>
    %151 = arith.mulf %116, %150 : vector<1x4xf32>
    %152 = arith.mulf %128, %151 : vector<1x4xf32>
    %153 = arith.subf %117, %152 : vector<1x4xf32>
    %154 = vector.broadcast %151 : vector<1x4xf32> to vector<2x4xf32>
    %155 = arith.mulf %118, %154 : vector<2x4xf32>
    %156 = vector.broadcast %153 : vector<1x4xf32> to vector<2x4xf32>
    %157 = arith.addf %155, %156 : vector<2x4xf32>
    %cst_32 = arith.constant 0.000000e+00 : f32
    %158 = vector.broadcast %cst_32 : f32 to vector<2x4xf32>
    %159 = arith.maximumf %157, %158 : vector<2x4xf32>
    %160 = vector.broadcast %151 : vector<1x4xf32> to vector<2x4xf32>
    %161 = arith.mulf %119, %160 : vector<2x4xf32>
    %162 = vector.broadcast %153 : vector<1x4xf32> to vector<2x4xf32>
    %163 = arith.addf %161, %162 : vector<2x4xf32>
    %cst_33 = arith.constant 0.000000e+00 : f32
    %164 = vector.broadcast %cst_33 : f32 to vector<2x4xf32>
    %165 = arith.maximumf %163, %164 : vector<2x4xf32>
    %166 = vector.broadcast %151 : vector<1x4xf32> to vector<2x4xf32>
    %167 = arith.mulf %120, %166 : vector<2x4xf32>
    %168 = vector.broadcast %153 : vector<1x4xf32> to vector<2x4xf32>
    %169 = arith.addf %167, %168 : vector<2x4xf32>
    %cst_34 = arith.constant 0.000000e+00 : f32
    %170 = vector.broadcast %cst_34 : f32 to vector<2x4xf32>
    %171 = arith.maximumf %169, %170 : vector<2x4xf32>
    %172 = vector.broadcast %151 : vector<1x4xf32> to vector<2x4xf32>
    %173 = arith.mulf %121, %172 : vector<2x4xf32>
    %174 = vector.broadcast %153 : vector<1x4xf32> to vector<2x4xf32>
    %175 = arith.addf %173, %174 : vector<2x4xf32>
    %cst_35 = arith.constant 0.000000e+00 : f32
    %176 = vector.broadcast %cst_35 : f32 to vector<2x4xf32>
    %177 = arith.maximumf %175, %176 : vector<2x4xf32>
    %178 = tpu.concatenate %159, %165, %171, %177 in 1 : vector<2x4xf32>, vector<2x4xf32>, vector<2x4xf32>, vector<2x4xf32> -> vector<2x16xf32>
    %c0_36 = arith.constant 0 : index
    %c0_37 = arith.constant 0 : index
    %179 = vector.load %arg8[%c0_36, %c0_37] : memref<16x32xf32, #tpu.memory_space<vmem>>, vector<16x32xf32>
    %cst_38 = arith.constant dense<0.000000e+00> : vector<2x32xf32>
    %180 = tpu.matmul %178, %179, %cst_38 {dimension_numbers = #tpu.dot_dimension_numbers<[1], [0], [0], [1], [0, 0, 1, 1], [], []>} : vector<2x16xf32>, vector<16x32xf32>, vector<2x32xf32> -> vector<2x32xf32>
    %c0_39 = arith.constant 0 : index
    %c0_40 = arith.constant 0 : index
    %181 = vector.load %arg9[%c0_39, %c0_40] : memref<1x32xf32, #tpu.memory_space<vmem>>, vector<1x32xf32>
    %182 = vector.broadcast %181 : vector<1x32xf32> to vector<2x32xf32>
    %183 = arith.addf %180, %182 : vector<2x32xf32>
    %cst_41 = arith.constant 0.000000e+00 : f32
    %184 = vector.broadcast %cst_41 : f32 to vector<2x32xf32>
    %185 = arith.maximumf %183, %184 : vector<2x32xf32>
    %c0_42 = arith.constant 0 : index
    %c0_43 = arith.constant 0 : index
    %186 = vector.load %arg10[%c0_42, %c0_43] : memref<32x16xf32, #tpu.memory_space<vmem>>, vector<32x16xf32>
    %cst_44 = arith.constant dense<0.000000e+00> : vector<2x16xf32>
    %187 = tpu.matmul %185, %186, %cst_44 {dimension_numbers = #tpu.dot_dimension_numbers<[1], [0], [0], [1], [0, 0, 1, 1], [], []>} : vector<2x32xf32>, vector<32x16xf32>, vector<2x16xf32> -> vector<2x16xf32>
    %c0_45 = arith.constant 0 : index
    %c0_46 = arith.constant 0 : index
    %188 = vector.load %arg11[%c0_45, %c0_46] : memref<1x16xf32, #tpu.memory_space<vmem>>, vector<1x16xf32>
    %189 = vector.broadcast %188 : vector<1x16xf32> to vector<2x16xf32>
    %190 = arith.addf %187, %189 : vector<2x16xf32>
    %c0_47 = arith.constant 0 : index
    %c0_48 = arith.constant 0 : index
    %191 = vector.load %arg12[%c0_47, %c0_48] : memref<2x16xf32, #tpu.memory_space<vmem>>, vector<2x16xf32>
    tpu.vector_store %arg12[%c0_47, %c0_48], %190 {strides = array<i32>} : memref<2x16xf32, #tpu.memory_space<vmem>>, vector<2x16xf32>,
    return
  }
  func.func @transform_0(%arg0: i32) -> (i32, i32) {
    %c0_i32 = arith.constant 0 : i32
    %c0_i32_0 = arith.constant 0 : i32
    %c0_i32_1 = arith.constant 0 : i32
    return %c0_i32, %c0_i32_0 : i32, i32
  }
  func.func @transform_1(%arg0: i32) -> (i32, i32) {
    %c0_i32 = arith.constant 0 : i32
    %c0_i32_0 = arith.constant 0 : i32
    %c0_i32_1 = arith.constant 0 : i32
    return %c0_i32, %c0_i32_0 : i32, i32
  }
  func.func @transform_2(%arg0: i32) -> (i32, i32) {
    %c0_i32 = arith.constant 0 : i32
    %c0_i32_0 = arith.constant 0 : i32
    %c0_i32_1 = arith.constant 0 : i32
    return %c0_i32, %c0_i32_0 : i32, i32
  }
  func.func @transform_3(%arg0: i32) -> (i32, i32) {
    %c0_i32 = arith.constant 0 : i32
    %c0_i32_0 = arith.constant 0 : i32
    %c0_i32_1 = arith.constant 0 : i32
    return %c0_i32, %c0_i32_0 : i32, i32
  }
  func.func @transform_4(%arg0: i32) -> (i32, i32) {
    %c0_i32 = arith.constant 0 : i32
    %c0_i32_0 = arith.constant 0 : i32
    %c0_i32_1 = arith.constant 0 : i32
    return %c0_i32, %c0_i32_0 : i32, i32
  }
  func.func @transform_5(%arg0: i32) -> (i32, i32) {
    %c0_i32 = arith.constant 0 : i32
    %c0_i32_0 = arith.constant 0 : i32
    %c0_i32_1 = arith.constant 0 : i32
    return %c0_i32, %c0_i32_0 : i32, i32
  }
  func.func @transform_6(%arg0: i32) -> (i32, i32) {
    %c0_i32 = arith.constant 0 : i32
    %c0_i32_0 = arith.constant 0 : i32
    %c0_i32_1 = arith.constant 0 : i32
    return %c0_i32, %c0_i32_0 : i32, i32
  }
  func.func @transform_7(%arg0: i32) -> (i32, i32) {
    %c0_i32 = arith.constant 0 : i32
    %c0_i32_0 = arith.constant 0 : i32
    %c0_i32_1 = arith.constant 0 : i32
    return %c0_i32, %c0_i32_0 : i32, i32
  }
  func.func @transform_8(%arg0: i32) -> (i32, i32) {
    %c0_i32 = arith.constant 0 : i32
    %c0_i32_0 = arith.constant 0 : i32
    %c0_i32_1 = arith.constant 0 : i32
    return %c0_i32, %c0_i32_0 : i32, i32
  }
  func.func @transform_9(%arg0: i32) -> (i32, i32) {
    %c0_i32 = arith.constant 0 : i32
    %c0_i32_0 = arith.constant 0 : i32
    %c0_i32_1 = arith.constant 0 : i32
    return %c0_i32, %c0_i32_0 : i32, i32
  }
  func.func @transform_10(%arg0: i32) -> (i32, i32) {
    %c0_i32 = arith.constant 0 : i32
    %c0_i32_0 = arith.constant 0 : i32
    %c0_i32_1 = arith.constant 0 : i32
    return %c0_i32, %c0_i32_0 : i32, i32
  }
  func.func @transform_11(%arg0: i32) -> (i32, i32) {
    %c0_i32 = arith.constant 0 : i32
    %c0_i32_0 = arith.constant 0 : i32
    %c0_i32_1 = arith.constant 0 : i32
    return %c0_i32, %c0_i32_0 : i32, i32
  }
}

</mosaic_0001>

<bundles_post_ra>
// kernel: encoder_forward.1
= control target key start
LH: loop header
LB: loop body
LE: loop exit
PB: predicated region body
PF: predicated region fallthrough
CT: control target
= control target key end

     0   :  { %16 = vsyncpa [#allocation3], 0  ;;  %s1282_s0 = inlined_call_operand.hbm [shape: f32[2,240], index: 0, kind: input, shape index: {}]   ;;  %s1283_s1 = inlined_call_operand.hbm [shape: f32[240,64], index: 1, kind: input, shape index: {}]   ;;  %s1284_s2 = inlined_call_operand.vmem [shape: f32[1,8], index: 2, kind: input, shape index: {}]   ;;  %s1285_s3 = inlined_call_operand.vmem [shape: f32[1,8], index: 3, kind: input, shape index: {}]   ;;  %s1286_s4 = inlined_call_operand.hbm [shape: f32[64,16], index: 4, kind: input, shape index: {}]   ;;  %s1287_s5 = inlined_call_operand.vmem [shape: f32[1,4], index: 5, kind: input, shape index: {}]   ;;  %s1288_s6 = inlined_call_operand.vmem [shape: f32[1,4], index: 6, kind: input, shape index: {}]   ;;  %s1289_s7 = inlined_call_operand.vmem [shape: f32[16,32], index: 7, kind: input, shape index: {}]   ;;  %s1290_s8 = inlined_call_operand.vmem [shape: f32[1,32], index: 8, kind: input, shape index: {}]   ;;  %s1291_s9 = inlined_call_operand.hbm [shape: f32[32,16], index: 9, kind: input, shape index: {}]   ;;  %s1292_s10 = inlined_call_operand.vmem [shape: f32[1,16], index: 10, kind: input, shape index: {}]   ;;  %s1293_s11 = inlined_call_operand.vmem [shape: f32[2,16], index: 11, kind: output, shape index: {}]  }
   0x1   :  { %17 = vsyncpa [#allocation5], 0 }
   0x2   :  { %18 = vsyncpa [#allocation8], 0  ;;  %s974_s17 = smov [#allocation4]  }
   0x3   :  { %s34_s18 = sshll.u32 %s974_s17, 4  ;;  %s35_s18 = int_to_ptr.vmem [resolvable:$true] %s34_s18 }
   0x4   :  { %s896_s19 = scalar_lea.vmem %s35_s18, 3840  ;;  %p901_p1 = scmp.lt.s32.totalorder %s35_s18, %s35_s18 }
   0x5   :  { %p897_p0 = scmp.ne.s32.totalorder %s35_s18, %s896_s19  ;;  %p902_p2 = scmp.lt.s32.totalorder %s896_s19, %s896_s19 }
   0x7   :  { %p903_p3 = por %p902_p2, %p901_p1 }
   0x9   :  { %p904_p4 = pnand %p903_p3, %p897_p0 }
   0xb   :  { %907 = shalt.err (!%p904_p4)
}
   0xc   :  { %s975_s20 = smov 128   ;;  %s976_s21 = smov 8  }
   0xd   :  { %40 = dma.hbm_to_vmem [thread:$0]  %s1283_s1, 3840, %s35_s18, [#allocation5], %s975_s20, %s975_s20, %s976_s21  }
   0xe   :  { %s977_s24 = smov [#allocation2]   ;;  %s978_s26 = smov [#allocation6]  }
   0xf   :  { %s25_s25 = sshll.u32 %s977_s24, 4  ;;  %s50_s27 = sshll.u32 %s978_s26, 4  ;;  %s26_s25 = int_to_ptr.vmem [resolvable:$true] %s25_s25  ;;  %s51_s27 = int_to_ptr.vmem [resolvable:$true] %s50_s27 }
  0x10   :  { %s916_s28 = scalar_lea.vmem %s26_s25, 64  ;;  %p921_p6 = scmp.lt.s32.totalorder %s26_s25, %s26_s25 }
  0x11   :  { %p917_p5 = scmp.ne.s32.totalorder %s26_s25, %s916_s28  ;;  %p922_p7 = scmp.lt.s32.totalorder %s916_s28, %s916_s28 }
  0x13   :  { %p923_p8 = por %p922_p7, %p921_p6 }
  0x15   :  { %p924_p9 = pnand %p923_p8, %p917_p5 }
  0x17   :  { %927 = shalt.err (!%p924_p9)
}
  0x18   :  { %28 = dma.hbm_to_vmem [thread:$0]  %s1282_s0, 64, %s26_s25, [#allocation3]  }
  0x19   :  { %s936_s12 = scalar_lea.vmem %s51_s27, 1024  ;;  %p941_p11 = scmp.lt.s32.totalorder %s51_s27, %s51_s27 }
  0x1a   :  { %p937_p10 = scmp.ne.s32.totalorder %s51_s27, %s936_s12  ;;  %p942_p12 = scmp.lt.s32.totalorder %s936_s12, %s936_s12 }
  0x1c   :  { %p943_p13 = por %p942_p12, %p941_p11 }
  0x1e   :  { %p944_p0 = pnand %p943_p13, %p937_p10 }
  0x20   :  { %947 = shalt.err (!%p944_p0)
}
  0x21   :  { %56 = dma.hbm_to_vmem [thread:$0]  %s1286_s4, 1024, %s51_s27, [#allocation5], %s975_s20, %s975_s20, %s976_s21  }
  0x22   :  { %s979_s14 = smov [#allocation7]  }
  0x23   :  { %s70_s15 = sshll.u32 %s979_s14, 4  ;;  %s71_s15 = int_to_ptr.vmem [resolvable:$true] %s70_s15 }
  0x24   :  { %s956_s16 = scalar_lea.vmem %s71_s15, 512  ;;  %p961_p2 = scmp.lt.s32.totalorder %s71_s15, %s71_s15 }
  0x25   :  { %p957_p1 = scmp.ne.s32.totalorder %s71_s15, %s956_s16  ;;  %p962_p3 = scmp.lt.s32.totalorder %s956_s16, %s956_s16 }
  0x27   :  { %p963_p4 = por %p962_p3, %p961_p2 }
  0x29   :  { %p964_p5 = pnand %p963_p4, %p957_p1 }
  0x2b   :  { %967 = shalt.err (!%p964_p5)
}
  0x2c   :  { %76 = dma.hbm_to_vmem [thread:$0]  %s1291_s9, 512, %s71_s15, [#allocation8], %s975_s20, %s975_s20, %s976_s21  }
  0x2d   :  { %968 = dma.done.wait [#allocation3], 64  }
  0x2e   :  { %969 = vsyncadd [#allocation3], 4294967232 }
  0x2f   :  { %970 = dma.done.wait [#allocation5], 4864  }
  0x30   :  { %971 = vsyncadd [#allocation5], 4294962432 }
  0x31   :  { %972 = dma.done.wait [#allocation8], 512  }
  0x32   :  { %973 = vsyncadd [#allocation8], 4294966784  ;;  %v980_v0 = vmov 0.0   ;;  %v107_v1 = vld [vmem:[#allocation4 + $0x78] sm:$0xff]  ;;  %v106_v2 = vld [vmem:[#allocation4 + $0x70] sm:$0xff]  ;;  %vm132_vm0 = vcmask 916480  }
  0x33   :  { %135 = vmatprep.subr.mxu0 %v980_v0  ;;  %822 = vmatprep.subr.mxu1 %v980_v0  ;;  %v105_v3 = vld [vmem:[#allocation4 + $0x68] sm:$0xff]  ;;  %v104_v4 = vld [vmem:[#allocation4 + $0x60] sm:$0xff]  ;;  %v103_v5 = vld [vmem:[#allocation4 + $0x58] sm:$0xff]  ;;  %s981_s4 = smov 104   ;;  %s982_s9 = smov 120   ;;  %vm236_vm1 = vcmask 58368  }
  0x34   :  { %136 = vmatpush1.msra.mxu0 %v107_v1  ;;  %v102_v6 = vld [vmem:[#allocation4 + $0x50] sm:$0xff]  ;;  %v101_v7 = vld [vmem:[#allocation4 + $0x48] sm:$0xff]  ;;  %v1087_v8 = vld.sshfl [vmem:[#allocation2] sm:$0x33 pattern:$0x76325410] }
  0x35   :  { %137 = vmatprep.subr.mxu0 %v980_v0  ;;  %v130_v9 = vcombine.high %v1087_v8, %v1087_v8  ;;  %v100_v10 = vld [vmem:[#allocation4 + $0x40] sm:$0xff]  ;;  %v99_v11 = vld [vmem:[#allocation4 + $0x38] sm:$0xff]  ;;  %v98_v12 = vld [vmem:[#allocation4 + $0x30] sm:$0xff]  ;;  %s983_s18 = smov 96   ;;  %s984_s19 = smov 112   ;;  %vm994_vm2 = vmmov 0  }
  0x36   :  { %138 = vmatpush1.msra.mxu0 %v106_v2  ;;  %v97_v13 = vld [vmem:[#allocation4 + $0x28] sm:$0xff]  ;;  %v96_v14 = vld [vmem:[#allocation4 + $0x20] sm:$0xff]  ;;  %v95_v15 = vld [vmem:[#allocation4 + $0x18] sm:$0xff]  ;;  %s985_s20 = smov 80   ;;  %s986_s22 = smov 88   ;;  %838 = vmatprep.mubr.msk.f32.mxu1 %vm994_vm2, %v980_v0  ;;  %vm409_vm3 = vcmask 64512  }
  0x37   :  { %139 = vmatprep.subr.mxu0 %v980_v0  ;;  %799 = vmatprep.mubr.msk.f32.mxu0 %vm132_vm0, %v130_v9  ;;  %v94_v16 = vld [vmem:[#allocation4 + $0x10] sm:$0xff]  ;;  %v93_v17 = vld [vmem:[#allocation4 + $0x8] sm:$0xff]  ;;  %v92_v18 = vld [vmem:[#allocation4] sm:$0xff]  ;;  %s987_s23 = smov 72   ;;  %s988_s24 = smov 16   ;;  %vm411_vm4 = vcmask 130048  }
  0x38   :  { %140 = vmatpush1.msra.mxu0 %v105_v3  ;;  %v121_v19 = vld [vmem:[#allocation4 + $0xe8] sm:$0xff]  ;;  %v120_v20 = vld [vmem:[#allocation4 + $0xe0] sm:$0xff]  ;;  %v119_v21 = vld [vmem:[#allocation4 + $0xd8] sm:$0xff]  ;;  %s989_s25 = smov 32   ;;  %s990_s26 = smov 24   ;;  %vm413_vm5 = vcmask 195584  }
  0x39   :  { %141 = vmatprep.subr.mxu0 %v980_v0  ;;  %v118_v22 = vld [vmem:[#allocation4 + $0xd0] sm:$0xff]  ;;  %v117_v23 = vld [vmem:[#allocation4 + $0xc8] sm:$0xff]  ;;  %v116_v24 = vld [vmem:[#allocation4 + $0xc0] sm:$0xff]  ;;  %s991_s27 = smov 48   ;;  %s992_s28 = smov 40   ;;  %vm415_vm6 = vcmask 261120  }
  0x3a   :  { %142 = vmatpush1.msra.mxu0 %v104_v4  ;;  %v115_v25 = vld [vmem:[#allocation4 + $0xb8] sm:$0xff]  ;;  %v114_v26 = vld [vmem:[#allocation4 + $0xb0] sm:$0xff]  ;;  %v113_v27 = vld [vmem:[#allocation4 + $0xa8] sm:$0xff]  ;;  %s993_s29 = smov 56   ;;  %vm417_vm7 = vcmask 326656   ;;  %vm419_vm8 = vcmask 392192  }
  0x3b   :  { %143 = vmatprep.subr.mxu0 %v980_v0  ;;  %v112_v28 = vld [vmem:[#allocation4 + $0xa0] sm:$0xff]  ;;  %v111_v29 = vld [vmem:[#allocation4 + $0x98] sm:$0xff]  ;;  %v110_v30 = vld [vmem:[#allocation4 + $0x90] sm:$0xff]  ;;  %vm421_vm9 = vcmask 457728   ;;  %vm431_vm10 = vcmask 523264   ;;  %vm520_vm11 = vcmask 25600  }
  0x3c   :  { %144 = vmatpush1.msra.mxu0 %v103_v5  ;;  %v109_v31 = vld [vmem:[#allocation4 + $0x88] sm:$0xff]  ;;  %v108_v32 = vld [vmem:[#allocation4 + $0x80] sm:$0xff]  ;;  %s997_s14 = smov 4   ;;  %s998_s15 = smov 12   ;;  %vm617_vm12 = vcmask 31744   ;;  %vm620_vm13 = vcmask 97280  }
  0x3d   :  { %145 = vmatprep.subr.mxu0 %v980_v0  ;;  %vm789_vm14 = vcmask 123904  }
  0x3e   :  { %146 = vmatpush1.msra.mxu0 %v102_v6 }
  0x3f   :  { %147 = vmatprep.subr.mxu0 %v980_v0 }
  0x40   :  { %148 = vmatpush1.msra.mxu0 %v101_v7 }
  0x41   :  { %149 = vmatprep.subr.mxu0 %v980_v0 }
  0x42   :  { %150 = vmatpush1.msra.mxu0 %v100_v10 }
  0x43   :  { %151 = vmatprep.subr.mxu0 %v980_v0 }
  0x44   :  { %152 = vmatpush1.msra.mxu0 %v99_v11 }
  0x45   :  { %153 = vmatprep.subr.mxu0 %v980_v0 }
  0x46   :  { %154 = vmatpush1.msra.mxu0 %v98_v12 }
  0x47   :  { %155 = vmatprep.subr.mxu0 %v980_v0 }
  0x48   :  { %156 = vmatpush1.msra.mxu0 %v97_v13 }
  0x49   :  { %157 = vmatprep.subr.mxu0 %v980_v0 }
  0x4a   :  { %158 = vmatpush1.msra.mxu0 %v96_v14 }
  0x4b   :  { %159 = vmatprep.subr.mxu0 %v980_v0 }
  0x4c   :  { %160 = vmatpush1.msra.mxu0 %v95_v15 }
  0x4d   :  { %161 = vmatprep.subr.mxu0 %v980_v0 }
  0x4e   :  { %162 = vmatpush1.msra.mxu0 %v94_v16 }
  0x4f   :  { %163 = vmatprep.subr.mxu0 %v980_v0 }
  0x50   :  { %164 = vmatpush1.msra.mxu0 %v93_v17 }
  0x51   :  { %165 = vmatprep.subr.mxu0 %v980_v0 }
  0x52   :  { %166 = vmatpush1.msra.mxu0 %v92_v18 }
  0x53   :  { %171 = vmatprep.subr.mxu0 %v980_v0 }
  0x54   :  { %172 = vmatpush2.msra.mxu0 %v121_v19 }
  0x55   :  { %173 = vmatprep.subr.mxu0 %v980_v0 }
  0x56   :  { %174 = vmatpush2.msra.mxu0 %v120_v20 }
  0x57   :  { %175 = vmatprep.subr.mxu0 %v980_v0 }
  0x58   :  { %176 = vmatpush2.msra.mxu0 %v119_v21 }
  0x59   :  { %177 = vmatprep.subr.mxu0 %v980_v0 }
  0x5a   :  { %178 = vmatpush2.msra.mxu0 %v118_v22 }
  0x5b   :  { %179 = vmatprep.subr.mxu0 %v980_v0 }
  0x5c   :  { %180 = vmatpush2.msra.mxu0 %v117_v23 }
  0x5d   :  { %181 = vmatprep.subr.mxu0 %v980_v0 }
  0x5e   :  { %182 = vmatpush2.msra.mxu0 %v116_v24 }
  0x5f   :  { %183 = vmatprep.subr.mxu0 %v980_v0 }
  0x60   :  { %184 = vmatpush2.msra.mxu0 %v115_v25 }
  0x61   :  { %185 = vmatprep.subr.mxu0 %v980_v0 }
  0x62   :  { %186 = vmatpush2.msra.mxu0 %v114_v26 }
  0x63   :  { %187 = vmatprep.subr.mxu0 %v980_v0 }
  0x64   :  { %188 = vmatpush2.msra.mxu0 %v113_v27 }
  0x65   :  { %189 = vmatprep.subr.mxu0 %v980_v0 }
  0x66   :  { %190 = vmatpush2.msra.mxu0 %v112_v28 }
  0x67   :  { %191 = vmatprep.subr.mxu0 %v980_v0 }
  0x68   :  { %192 = vmatpush2.msra.mxu0 %v111_v29 }
  0x69   :  { %193 = vmatprep.subr.mxu0 %v980_v0 }
  0x6a   :  { %194 = vmatpush2.msra.mxu0 %v110_v30 }
  0x6b   :  { %195 = vmatprep.subr.mxu0 %v980_v0 }
  0x6c   :  { %196 = vmatpush2.msra.mxu0 %v109_v31 }
  0x6d   :  { %197 = vmatprep.subr.mxu0 %v980_v0 }
  0x6e   :  { %198 = vmatpush2.msra.mxu0 %v108_v32 }
  0x6f   :  { %200 = vmatmul.mubr.f32.vlgmr.msra.gmra.mxu0 %v1087_v8 }
 0x12f   :  { %v1116_v33 = vpop.f32.mrf.mxu0 }
 0x130   :  { %216 = vrot.lane.b32.xlu1 %v1116_v33, %s981_s4  ;;  %208 = vrot.lane.b32.xlu0 %v1116_v33, %s982_s9 }
 0x131   :  { %v203_v34 = vpop.f32.mrf.mxu0 }
 0x134   :  { %220 = vrot.lane.b32.xlu1 %v1116_v33, %s983_s18  ;;  %212 = vrot.lane.b32.xlu0 %v1116_v33, %s984_s19 }
 0x138   :  { %228 = vrot.lane.b32.xlu1 %v1116_v33, %s985_s20  ;;  %224 = vrot.lane.b32.xlu0 %v1116_v33, %s986_s22 }
 0x13c   :  { %232 = vrot.lane.b32.xlu0 %v1116_v33, %s987_s23 }
 0x1a2   :  { %v217_v35 = vpop.permute.xlu1 %216  ;;  %v209_v36 = vpop.permute.xlu0 %208 }
 0x1a3   :  { %v211_v37 = vadd.f32 %v209_v36, %v1116_v33 }
 0x1a6   :  { %v213_v38 = vpop.permute.xlu0 %212  ;;  %v221_v40 = vpop.permute.xlu1 %220 }
 0x1a7   :  { %v215_v39 = vadd.f32 %v213_v38, %v211_v37 }
 0x1a9   :  { %v219_v41 = vadd.f32 %v217_v35, %v215_v39 }
 0x1aa   :  { %v225_v42 = vpop.permute.xlu0 %224  ;;  %v229_v45 = vpop.permute.xlu1 %228 }
 0x1ab   :  { %v223_v43 = vadd.f32 %v221_v40, %v219_v41  ;;  %v332_v41 = vlaneseq }
 0x1ad   :  { %v227_v44 = vadd.f32 %v225_v42, %v223_v43  ;;  %v333_v42 = vshrl.u32 %v332_v41, 7  ;;  %v205_v43 = vld [vmem:[%s1284_s2] sm:$0x1]  ;;  %s995_s2 = smov 124  }
 0x1ae   :  { %v233_v47 = vpop.permute.xlu0 %232 }
 0x1af   :  { %v231_v46 = vadd.f32 %v229_v45, %v227_v44  ;;  %v1170_v44 = vsub.s32 0, %v333_v42 }
 0x1b1   :  { %v235_v48 = vadd.f32 %v233_v47, %v231_v46  ;;  %v206_v47 = vld [vmem:[%s1285_s3] sm:$0x1]  ;;  %s996_s3 = smov 116  }
 0x1b3   :  { %v237_v49 = vsel %vm236_vm1, %v235_v48, 0.0 }
 0x1b4   :  { %v238_v50 = vrot.slane %v237_v49, 4 }
 0x1b6   :  { %v239_v51 = vadd.f32 %v238_v50, %v237_v49 }
 0x1b8   :  { %v240_v52 = vrot.slane %v239_v51, 2 }
 0x1ba   :  { %v241_v53 = vadd.f32 %v240_v52, %v239_v51  ;;  %v430_v51 = vld [vmem:[#allocation6 + $0x38] sm:$0xff] }
 0x1bb   :  { %823 = vmatpush3.msra.mxu1 %v430_v51 }
 0x1bc   :  { %v242_v54 = vrot.slane %v241_v53, 1  ;;  %824 = vmatprep.subr.mxu1 %v980_v0 }
 0x1be   :  { %v243_v55 = vadd.f32 %v242_v54, %v241_v53  ;;  %v429_v54 = vld [vmem:[#allocation6 + $0x30] sm:$0xff] }
 0x1bf   :  { %825 = vmatpush3.msra.mxu1 %v429_v54 }
 0x1c0   :  { %v1134_v56 = vmul.f32 0.0625, %v243_v55  ;;  %826 = vmatprep.subr.mxu1 %v980_v0 }
 0x1c2   :  { %258 = vrot.lane.b32.xlu0 %v1134_v56, %s988_s24  ;;  %248 = vrot.lane.b32.xlu1 %v1134_v56, %s976_s21  ;;  %v245_v15 = vsub.f32 %v1116_v33, %v1134_v56 }
 0x1c4   :  { %v246_v16 = vmul.f32 %v245_v15, %v245_v15 }
 0x1c6   :  { %278 = vrot.lane.b32.xlu0 %v1134_v56, %s989_s25  ;;  %268 = vrot.lane.b32.xlu1 %v1134_v56, %s990_s26 }
 0x1ca   :  { %298 = vrot.lane.b32.xlu0 %v1134_v56, %s991_s27  ;;  %288 = vrot.lane.b32.xlu1 %v1134_v56, %s992_s28 }
 0x1ce   :  { %308 = vrot.lane.b32.xlu1 %v1134_v56, %s993_s29 }
 0x234   :  { %v259_v57 = vpop.permute.xlu0 %258  ;;  %v249_v58 = vpop.permute.xlu1 %248 }
 0x235   :  { %v261_v59 = vsub.f32 %v1116_v33, %v259_v57  ;;  %v251_v60 = vsub.f32 %v1116_v33, %v249_v58  ;;  %v427_v57 = vld [vmem:[#allocation6 + $0x20] sm:$0xff]  ;;  %v426_v58 = vld [vmem:[#allocation6 + $0x18] sm:$0xff] }
 0x237   :  { %v262_v61 = vmul.f32 %v261_v59, %v261_v59  ;;  %v252_v62 = vmul.f32 %v251_v60, %v251_v60  ;;  %v425_v59 = vld [vmem:[#allocation6 + $0x10] sm:$0xff]  ;;  %v424_v60 = vld [vmem:[#allocation6 + $0x8] sm:$0xff] }
 0x238   :  { %v279_v63 = vpop.permute.xlu0 %278  ;;  %v269_v1 = vpop.permute.xlu1 %268 }
 0x239   :  { %v281_v2 = vsub.f32 %v1116_v33, %v279_v63  ;;  %v271_v3 = vsub.f32 %v1116_v33, %v269_v1  ;;  %264 = vrot.lane.b32.xlu1 %v262_v61, %s984_s19  ;;  %254 = vrot.lane.b32.xlu0 %v252_v62, %s982_s9  ;;  %v423_v61 = vld [vmem:[#allocation6] sm:$0xff] }
 0x23b   :  { %v282_v4 = vmul.f32 %v281_v2, %v281_v2  ;;  %v272_v5 = vmul.f32 %v271_v3, %v271_v3 }
 0x23c   :  { %v299_v6 = vpop.permute.xlu0 %298  ;;  %v289_v7 = vpop.permute.xlu1 %288 }
 0x23d   :  { %v301_v8 = vsub.f32 %v1116_v33, %v299_v6  ;;  %v291_v9 = vsub.f32 %v1116_v33, %v289_v7  ;;  %284 = vrot.lane.b32.xlu1 %v282_v4, %s983_s18  ;;  %274 = vrot.lane.b32.xlu0 %v272_v5, %s981_s4 }
 0x23f   :  { %v302_v10 = vmul.f32 %v301_v8, %v301_v8  ;;  %v292_v11 = vmul.f32 %v291_v9, %v291_v9 }
 0x240   :  { %v309_v12 = vpop.permute.xlu1 %308 }
 0x241   :  { %v311_v13 = vsub.f32 %v1116_v33, %v309_v12  ;;  %304 = vrot.lane.b32.xlu1 %v302_v10, %s985_s20  ;;  %294 = vrot.lane.b32.xlu0 %v292_v11, %s986_s22 }
 0x243   :  { %v312_v14 = vmul.f32 %v311_v13, %v311_v13 }
 0x245   :  { %314 = vrot.lane.b32.xlu0 %v312_v14, %s987_s23 }
 0x2ab   :  { %v255_v17 = vpop.permute.xlu0 %254  ;;  %v265_v18 = vpop.permute.xlu1 %264 }
 0x2ac   :  { %v257_v19 = vadd.f32 %v255_v17, %v246_v16 }
 0x2ae   :  { %v267_v20 = vadd.f32 %v265_v18, %v257_v19 }
 0x2af   :  { %v275_v21 = vpop.permute.xlu0 %274  ;;  %v285_v22 = vpop.permute.xlu1 %284 }
 0x2b0   :  { %v277_v23 = vadd.f32 %v275_v21, %v267_v20 }
 0x2b2   :  { %v287_v24 = vadd.f32 %v285_v22, %v277_v23 }
 0x2b3   :  { %v295_v25 = vpop.permute.xlu0 %294  ;;  %v305_v27 = vpop.permute.xlu1 %304 }
 0x2b4   :  { %v297_v26 = vadd.f32 %v295_v25, %v287_v24 }
 0x2b6   :  { %v307_v28 = vadd.f32 %v305_v27, %v297_v26 }
 0x2b7   :  { %v315_v29 = vpop.permute.xlu0 %314 }
 0x2b8   :  { %v317_v30 = vadd.f32 %v315_v29, %v307_v28 }
 0x2ba   :  { %v318_v31 = vsel %vm236_vm1, %v317_v30, 0.0 }
 0x2bb   :  { %v319_v32 = vrot.slane %v318_v31, 4 }
 0x2bd   :  { %v320_v34 = vadd.f32 %v319_v32, %v318_v31 }
 0x2bf   :  { %v321_v35 = vrot.slane %v320_v34, 2 }
 0x2c1   :  { %v322_v36 = vadd.f32 %v321_v35, %v320_v34 }
 0x2c3   :  { %v323_v37 = vrot.slane %v322_v36, 1 }
 0x2c5   :  { %v324_v38 = vadd.f32 %v323_v37, %v322_v36 }
 0x2c7   :  { %v325_v39 = vmul.f32 0.0625, %v324_v38 }
 0x2c9   :  { %v326_v40 = vadd.f32 1e-05, %v325_v39 }
 0x2cb   :  { %884 = vrsqrt.f32 %v326_v40 }
 0x2d8   :  { %v885_v45 = vpop.eup %884 }
 0x2d9   :  { %v328_v46 = vmul.f32 %v885_v45, %v205_v43 }
 0x2db   :  { %v329_v48 = vmul.f32 %v328_v46, %v1134_v56  ;;  %v335_v49 = vrot.slane %v328_v46, %v1170_v44  ;;  %v428_v56 = vld [vmem:[#allocation6 + $0x28] sm:$0xff] }
 0x2dc   :  { %827 = vmatpush3.msra.mxu1 %v428_v56 }
 0x2dd   :  { %v330_v50 = vsub.f32 %v206_v47, %v329_v48  ;;  %355 = vrot.lane.b32.xlu0 %v335_v49, %s988_s24  ;;  %346 = vrot.lane.b32.xlu1 %v335_v49, %s976_s21  ;;  %v337_v53 = vmul.f32 %v335_v49, %v1116_v33 }
 0x2de   :  { %828 = vmatprep.subr.mxu1 %v980_v0 }
 0x2df   :  { %v342_v52 = vrot.slane %v330_v50, %v1170_v44  ;;  %829 = vmatpush3.msra.mxu1 %v427_v57 }
 0x2e0   :  { %830 = vmatprep.subr.mxu1 %v980_v0 }
 0x2e1   :  { %364 = vrot.lane.b32.xlu0 %v335_v49, %s990_s26  ;;  %350 = vrot.lane.b32.xlu1 %v342_v52, %s976_s21  ;;  %v1184_v55 = vadd.f32 %v342_v52, %v337_v53 }
 0x2e2   :  { %831 = vmatpush3.msra.mxu1 %v426_v58 }
 0x2e3   :  { %832 = vmatprep.subr.mxu1 %v980_v0  ;;  %v345_v23 = vmax.f32 %v1184_v55, 0.0 }
 0x2e4   :  { %833 = vmatpush3.msra.mxu1 %v425_v59 }
 0x2e5   :  { %373 = vrot.lane.b32.xlu0 %v335_v49, %s989_s25  ;;  %359 = vrot.lane.b32.xlu1 %v342_v52, %s988_s24 }
 0x2e6   :  { %834 = vmatprep.subr.mxu1 %v980_v0 }
 0x2e7   :  { %835 = vmatpush3.msra.mxu1 %v424_v60 }
 0x2e8   :  { %836 = vmatprep.subr.mxu1 %v980_v0 }
 0x2e9   :  { %382 = vrot.lane.b32.xlu0 %v335_v49, %s992_s28  ;;  %368 = vrot.lane.b32.xlu1 %v342_v52, %s990_s26 }
 0x2ea   :  { %837 = vmatpush3.msra.mxu1 %v423_v61 }
 0x2eb   :  { %841 = vmatprep.subr.mxu1 %v980_v0 }
 0x2ed   :  { %391 = vrot.lane.b32.xlu0 %v335_v49, %s991_s27  ;;  %377 = vrot.lane.b32.xlu1 %v342_v52, %s989_s25 }
 0x2f1   :  { %400 = vrot.lane.b32.xlu0 %v335_v49, %s993_s29  ;;  %386 = vrot.lane.b32.xlu1 %v342_v52, %s992_s28 }
 0x2f5   :  { %404 = vrot.lane.b32.xlu0 %v342_v52, %s993_s29  ;;  %395 = vrot.lane.b32.xlu1 %v342_v52, %s991_s27 }
 0x34f   :  { %v356_v62 = vpop.permute.xlu0 %355  ;;  %v347_v63 = vpop.permute.xlu1 %346 }
 0x350   :  { %v349_v7 = vmul.f32 %v347_v63, %v1116_v33  ;;  %v358_v8 = vmul.f32 %v356_v62, %v1116_v33 }
 0x353   :  { %v365_v1 = vpop.permute.xlu0 %364  ;;  %v351_v2 = vpop.permute.xlu1 %350 }
 0x354   :  { %v367_v9 = vmul.f32 %v365_v1, %v1116_v33  ;;  %v353_v10 = vadd.f32 %v351_v2, %v349_v7 }
 0x356   :  { %v354_v18 = vmax.f32 %v353_v10, 0.0 }
 0x357   :  { %v374_v3 = vpop.permute.xlu0 %373  ;;  %v360_v4 = vpop.permute.xlu1 %359 }
 0x358   :  { %v376_v13 = vmul.f32 %v374_v3, %v1116_v33  ;;  %v362_v14 = vadd.f32 %v360_v4, %v358_v8  ;;  %v410_v28 = vsel %vm409_vm3, %v345_v23, %v354_v18 }
 0x35a   :  { %v363_v21 = vmax.f32 %v362_v14, 0.0 }
 0x35b   :  { %v383_v5 = vpop.permute.xlu0 %382  ;;  %v369_v6 = vpop.permute.xlu1 %368 }
 0x35c   :  { %v371_v15 = vadd.f32 %v369_v6, %v367_v9  ;;  %v385_v16 = vmul.f32 %v383_v5, %v1116_v33  ;;  %v412_v32 = vsel %vm411_vm4, %v410_v28, %v363_v21 }
 0x35e   :  { %v372_v24 = vmax.f32 %v371_v15, 0.0 }
 0x35f   :  { %v392_v11 = vpop.permute.xlu0 %391  ;;  %v378_v12 = vpop.permute.xlu1 %377 }
 0x360   :  { %v380_v17 = vadd.f32 %v378_v12, %v376_v13  ;;  %v394_v25 = vmul.f32 %v392_v11, %v1116_v33  ;;  %v414_v36 = vsel %vm413_vm5, %v412_v32, %v372_v24 }
 0x362   :  { %v381_v26 = vmax.f32 %v380_v17, 0.0 }
 0x363   :  { %v401_v19 = vpop.permute.xlu0 %400  ;;  %v387_v20 = vpop.permute.xlu1 %386 }
 0x364   :  { %v389_v22 = vadd.f32 %v387_v20, %v385_v16  ;;  %v403_v27 = vmul.f32 %v401_v19, %v1116_v33  ;;  %v416_v37 = vsel %vm415_vm6, %v414_v36, %v381_v26  ;;  %v623_v26 = vld [vmem:[%s1289_s7 + $0x8] sm:$0xff] }
 0x366   :  { %v390_v29 = vmax.f32 %v389_v22, 0.0  ;;  %v505_v22 = vld [vmem:[%s1287_s5] sm:$0x1] }
 0x367   :  { %v405_v30 = vpop.permute.xlu0 %404  ;;  %v396_v31 = vpop.permute.xlu1 %395 }
 0x368   :  { %v407_v34 = vadd.f32 %v405_v30, %v403_v27  ;;  %v398_v35 = vadd.f32 %v396_v31, %v394_v25  ;;  %v418_v40 = vsel %vm417_vm7, %v416_v37, %v390_v29  ;;  %v506_v25 = vld [vmem:[%s1288_s6] sm:$0x1] }
 0x369   :  { %v622_v29 = vld [vmem:[%s1289_s7] sm:$0xff] }
 0x36a   :  { %v408_v38 = vmax.f32 %v407_v34, 0.0  ;;  %v399_v39 = vmax.f32 %v398_v35, 0.0 }
 0x36c   :  { %v420_v33 = vsel %vm419_vm8, %v418_v40, %v399_v39 }
 0x36d   :  { %v422_v41 = vsel %vm421_vm9, %v420_v33, %v408_v38 }
 0x36e   :  { %839 = vmatmul.mubr.msk.f32.vlgmr.msra.gmra.mxu1 %vm431_vm10, %v422_v41 }
 0x36f   :  { %845 = vmatprep.mubr.msk.f32.mxu1 %vm994_vm2, %v980_v0  ;;  %842 = vmatpush3.msra.mxu1 %v623_v26 }
 0x370   :  { %843 = vmatprep.subr.mxu1 %v980_v0 }
 0x371   :  { %844 = vmatpush3.msra.mxu1 %v622_v29 }
 0x372   :  { %848 = vmatprep.subr.mxu1 %v980_v0 }
 0x42e   :  { %v1218_v42 = vpop.f32.mrf.mxu1 }
 0x42f   :  { %512 = vrot.lane.b32.xlu0 %v1218_v42, %s982_s9  ;;  %508 = vrot.lane.b32.xlu1 %v1218_v42, %s995_s2 }
 0x430   :  { %v840_v43 = vpop.f32.mrf.mxu1 }
 0x433   :  { %516 = vrot.lane.b32.xlu1 %v1218_v42, %s996_s3 }
 0x4a1   :  { %v509_v45 = vpop.permute.xlu1 %508  ;;  %v513_v47 = vpop.permute.xlu0 %512 }
 0x4a2   :  { %v511_v46 = vadd.f32 %v509_v45, %v1218_v42 }
 0x4a4   :  { %v515_v48 = vadd.f32 %v513_v47, %v511_v46 }
 0x4a5   :  { %v517_v49 = vpop.permute.xlu1 %516 }
 0x4a6   :  { %v519_v50 = vadd.f32 %v517_v49, %v515_v48 }
 0x4a8   :  { %v521_v51 = vsel %vm520_vm11, %v519_v50, 0.0 }
 0x4a9   :  { %v522_v52 = vrot.slane %v521_v51, 4 }
 0x4ab   :  { %v523_v53 = vadd.f32 %v522_v52, %v521_v51 }
 0x4ad   :  { %v524_v54 = vrot.slane %v523_v53, 2 }
 0x4af   :  { %v525_v55 = vadd.f32 %v524_v54, %v523_v53  ;;  %v708_v53 = vld [vmem:[#allocation7 + $0x18] sm:$0xff] }
 0x4b1   :  { %v526_v56 = vrot.slane %v525_v55, 1 }
 0x4b3   :  { %v527_v57 = vadd.f32 %v526_v56, %v525_v55  ;;  %v706_v55 = vld [vmem:[#allocation7 + $0x8] sm:$0xff]  ;;  %v705_v56 = vld [vmem:[#allocation7] sm:$0xff] }
 0x4b5   :  { %v528_v58 = vmul.f32 0.125, %v527_v57  ;;  %v801_v57 = vld [vmem:[%s1290_s8] ss:$0 sm:$0xff] }
 0x4b7   :  { %542 = vrot.lane.b32.xlu1 %v528_v58, %s976_s21  ;;  %532 = vrot.lane.b32.xlu0 %v528_v58, %s997_s14  ;;  %v529_v5 = vsub.f32 %v1218_v42, %v528_v58 }
 0x4b9   :  { %v530_v6 = vmul.f32 %v529_v5, %v529_v5 }
 0x4bb   :  { %552 = vrot.lane.b32.xlu0 %v528_v58, %s998_s15 }
 0x529   :  { %v543_v59 = vpop.permute.xlu1 %542  ;;  %v533_v60 = vpop.permute.xlu0 %532 }
 0x52a   :  { %v545_v61 = vsub.f32 %v1218_v42, %v543_v59  ;;  %v535_v62 = vsub.f32 %v1218_v42, %v533_v60 }
 0x52c   :  { %v546_v63 = vmul.f32 %v545_v61, %v545_v61  ;;  %v536_v1 = vmul.f32 %v535_v62, %v535_v62  ;;  %v803_v62 = vld [vmem:[%s1292_s10] ss:$0 sm:$0xff] }
 0x52d   :  { %v553_v2 = vpop.permute.xlu0 %552 }
 0x52e   :  { %v555_v3 = vsub.f32 %v1218_v42, %v553_v2  ;;  %548 = vrot.lane.b32.xlu0 %v546_v63, %s982_s9  ;;  %538 = vrot.lane.b32.xlu1 %v536_v1, %s995_s2 }
 0x530   :  { %v556_v4 = vmul.f32 %v555_v3, %v555_v3 }
 0x532   :  { %558 = vrot.lane.b32.xlu1 %v556_v4, %s996_s3 }
 0x5a0   :  { %v539_v7 = vpop.permute.xlu1 %538  ;;  %v549_v9 = vpop.permute.xlu0 %548 }
 0x5a1   :  { %v541_v8 = vadd.f32 %v539_v7, %v530_v6 }
 0x5a3   :  { %v551_v10 = vadd.f32 %v549_v9, %v541_v8 }
 0x5a4   :  { %v559_v11 = vpop.permute.xlu1 %558 }
 0x5a5   :  { %v561_v12 = vadd.f32 %v559_v11, %v551_v10 }
 0x5a7   :  { %v562_v13 = vsel %vm520_vm11, %v561_v12, 0.0 }
 0x5a8   :  { %v563_v14 = vrot.slane %v562_v13, 4 }
 0x5aa   :  { %v564_v15 = vadd.f32 %v563_v14, %v562_v13 }
 0x5ac   :  { %v565_v16 = vrot.slane %v564_v15, 2 }
 0x5ae   :  { %v566_v17 = vadd.f32 %v565_v16, %v564_v15 }
 0x5b0   :  { %v567_v18 = vrot.slane %v566_v17, 1 }
 0x5b2   :  { %v568_v19 = vadd.f32 %v567_v18, %v566_v17 }
 0x5b4   :  { %v569_v20 = vmul.f32 0.125, %v568_v19 }
 0x5b6   :  { %v570_v21 = vadd.f32 1e-05, %v569_v20 }
 0x5b8   :  { %886 = vrsqrt.f32 %v570_v21 }
 0x5c5   :  { %v887_v23 = vpop.eup %886 }
 0x5c6   :  { %v572_v24 = vmul.f32 %v887_v23, %v505_v22 }
 0x5c8   :  { %v579_v27 = vrot.slane %v572_v24, %v1170_v44  ;;  %v573_v28 = vmul.f32 %v572_v24, %v528_v58 }
 0x5ca   :  { %599 = vrot.lane.b32.xlu1 %v579_v27, %s976_s21  ;;  %590 = vrot.lane.b32.xlu0 %v579_v27, %s997_s14  ;;  %v574_v30 = vsub.f32 %v506_v25, %v573_v28  ;;  %v581_v32 = vmul.f32 %v579_v27, %v1218_v42 }
 0x5cc   :  { %v586_v31 = vrot.slane %v574_v30, %v1170_v44 }
 0x5ce   :  { %608 = vrot.lane.b32.xlu1 %v579_v27, %s998_s15  ;;  %594 = vrot.lane.b32.xlu0 %v586_v31, %s997_s14  ;;  %v588_v34 = vadd.f32 %v586_v31, %v581_v32 }
 0x5d0   :  { %v589_v48 = vmax.f32 %v588_v34, 0.0 }
 0x5d2   :  { %612 = vrot.lane.b32.xlu1 %v586_v31, %s998_s15  ;;  %603 = vrot.lane.b32.xlu0 %v586_v31, %s976_s21 }
 0x63c   :  { %v600_v35 = vpop.permute.xlu1 %599  ;;  %v591_v36 = vpop.permute.xlu0 %590 }
 0x63d   :  { %v593_v37 = vmul.f32 %v591_v36, %v1218_v42  ;;  %v602_v40 = vmul.f32 %v600_v35, %v1218_v42 }
 0x640   :  { %v609_v38 = vpop.permute.xlu1 %608  ;;  %v595_v39 = vpop.permute.xlu0 %594 }
 0x641   :  { %v597_v44 = vadd.f32 %v595_v39, %v593_v37  ;;  %v611_v33 = vmul.f32 %v609_v38, %v1218_v42  ;;  %v707_v42 = vld [vmem:[#allocation7 + $0x10] sm:$0xff] }
 0x643   :  { %v598_v41 = vmax.f32 %v597_v44, 0.0 }
 0x644   :  { %v613_v43 = vpop.permute.xlu1 %612  ;;  %v604_v45 = vpop.permute.xlu0 %603 }
 0x645   :  { %v615_v46 = vadd.f32 %v613_v43, %v611_v33  ;;  %v606_v47 = vadd.f32 %v604_v45, %v602_v40  ;;  %v618_v51 = vsel %vm617_vm12, %v589_v48, %v598_v41 }
 0x647   :  { %v616_v49 = vmax.f32 %v615_v46, 0.0  ;;  %v607_v50 = vmax.f32 %v606_v47, 0.0 }
 0x649   :  { %v619_v52 = vsel %vm409_vm3, %v618_v51, %v607_v50 }
 0x64a   :  { %v621_v54 = vsel %vm620_vm13, %v619_v52, %v616_v49 }
 0x64b   :  { %846 = vmatmul.mubr.msk.f32.vlgmr.msra.gmra.mxu1 %vm411_vm4, %v621_v54 }
 0x64c   :  { %849 = vmatpush3.msra.mxu1 %v708_v53  ;;  %856 = vmatprep.mubr.msk.f32.mxu1 %vm994_vm2, %v980_v0 }
 0x64d   :  { %850 = vmatprep.subr.mxu1 %v980_v0 }
 0x64e   :  { %851 = vmatpush3.msra.mxu1 %v707_v42 }
 0x64f   :  { %852 = vmatprep.subr.mxu1 %v980_v0 }
 0x650   :  { %853 = vmatpush3.msra.mxu1 %v706_v55 }
 0x651   :  { %854 = vmatprep.subr.mxu1 %v980_v0 }
 0x652   :  { %855 = vmatpush3.msra.mxu1 %v705_v56 }
 0x70b   :  { %v700_v58 = vpop.f32.mrf.mxu1 }
 0x70c   :  { %v701_v59 = vadd.f32 %v801_v57, %v700_v58 }
 0x70d   :  { %v847_v60 = vpop.f32.mrf.mxu1 }
 0x70e   :  { %v704_v61 = vmax.f32 %v701_v59, 0.0 }
 0x710   :  { %857 = vmatmul.mubr.msk.f32.vlgmr.msra.gmra.mxu1 %vm415_vm6, %v704_v61 }
 0x7d0   :  { %v785_v63 = vpop.f32.mrf.mxu1 }
 0x7d1   :  { %v786_v1 = vadd.f32 %v803_v62, %v785_v63 }
 0x7d2   :  { %v858_v0 = vpop.f32.mrf.mxu1 }
 0x7d3   :  { %790 = vst.msk [vmem:[%s1293_s11] sm:$0x3] %vm789_vm14, %v786_v1 }
 0x7d4   :  { %795 = vsyncpa [#allocation3], 1 }
 0x7d5   :  { %796 = vsyncpa [#allocation5], 1 }
 0x7d6   :  { %797 = vsyncpa [#allocation8], 1 }

</bundles_post_ra>
